<compile_context>
chip_gen: v6e
topology: v6e:2x2x1
jax: 0.10.0
libtpu: 0.0.40
codegen_flags: <defaults>
</compile_context>

<pallas_src>
import functools

import jax
import jax.numpy as jnp
from jax.experimental import pallas as pl
from jax.experimental.pallas import tpu as pltpu

BN_EPS = 1e-5


def _round_up(x, m):
    return (x + m - 1) // m * m


# --------------------------------------------------------------------------- #
# Kernel 1: BatchNorm statistics pass (layer 0 + swish, masked sum / sumsq)
# --------------------------------------------------------------------------- #
def _stats_kernel(x_ref, wmm_ref, wvec_ref, stats_ref, *, Kin, H0p, TB, B):
    """Per batch-tile: h = swish(x @ W0 + b0); accumulate masked sum and sumsq.

    stats_ref (2, H0p) has a constant block index across the ("arbitrary") grid
    axis, so it stays resident and acts as the accumulator.  Padded batch rows are
    masked and the column sums computed in the same M=1 MXU pass (valid-row @ h).
    """
    t = pl.program_id(0)
    cd = wmm_ref.dtype                                    # matmul operand dtype

    x = x_ref[...]                                        # (TB, Kin) f32
    w0 = wmm_ref[0:Kin, :H0p]                             # (Kin, H0p) cd
    b0 = wvec_ref[0:1, :H0p]                              # (1, H0p)   f32

    h = jnp.dot(x.astype(cd), w0, preferred_element_type=jnp.float32) + b0
    h = h * jax.nn.sigmoid(h)                             # swish, f32 on VPU/EUP

    # 1.0 for real batch rows, 0.0 for zero-padded rows of the last tile.
    lane = jax.lax.broadcasted_iota(jnp.int32, (1, TB), 1)
    vrow = ((lane + t * TB) < B).astype(jnp.float32)      # (1, TB)

    s1 = jnp.dot(vrow, h, preferred_element_type=jnp.float32)       # (1, H0p)
    s2 = jnp.dot(vrow, h * h, preferred_element_type=jnp.float32)   # (1, H0p)

    @pl.when(t == 0)
    def _():
        stats_ref[...] = jnp.zeros_like(stats_ref)

    stats_ref[0:1, :] += s1
    stats_ref[1:2, :] += s2


# --------------------------------------------------------------------------- #
# Kernel 2: full forward per batch tile (BN folded into scale/shift)
# --------------------------------------------------------------------------- #
def _forward_kernel(x_ref, wmm_ref, wvec_ref, bnp_ref, o_ref, *,
                    Kin, H0p, H1p, off_w1):
    cd = wmm_ref.dtype

    x = x_ref[...]                                        # (TB, Kin) f32

    # layer 0: Linear + swish (recomputed; x is only Kin lanes wide, cheaper than
    # round-tripping the (TB, H0p) activations through HBM).
    w0 = wmm_ref[0:Kin, :H0p]
    b0 = wvec_ref[0:1, :H0p]
    h = jnp.dot(x.astype(cd), w0, preferred_element_type=jnp.float32) + b0
    h = h * jax.nn.sigmoid(h)

    # BatchNorm1d (training mode), folded by the wrapper into h*scale + shift.
    h = h * bnp_ref[0:1, :H0p] + bnp_ref[1:2, :H0p]

    # layer 1: Linear + swish
    w1 = wmm_ref[off_w1:off_w1 + H0p, :H1p]
    b1 = wvec_ref[3:4, :H1p]
    h = jnp.dot(h.astype(cd), w1, preferred_element_type=jnp.float32) + b1
    h = h * jax.nn.sigmoid(h)                             # (TB, H1p) f32

    # fc head (H1 -> 1) as wf @ h^T: one M=1 MXU pass producing a lane-dense
    # (1, TB) row -> full-width store instead of per-row masked vst.msk.
    wf = wvec_ref[4:5, :H1p]                              # (1, H1p) f32
    bf = wvec_ref[5:6, 0:1]                               # (1, 1)   f32
    row = jax.lax.dot_general(
        wf, h, (((1,), (1,)), ((), ())),
        preferred_element_type=jnp.float32) + bf          # (1, TB)
    o_ref[...] = row.astype(o_ref.dtype)


# --------------------------------------------------------------------------- #
# Wrapper
# --------------------------------------------------------------------------- #
def critic_forward(obs, actions, packed, meta, *, batch_tile=512):
    """Fused Critic forward.  obs (B, S), actions (B, A); packed from pack_params."""
    wmm, wvec = packed["wmm"], packed["wvec"]
    S, A = meta["S"], meta["A"]
    Kin, H0p, H1p = meta["Kin"], meta["H0p"], meta["H1p"]
    off_w1, Rm, C = meta["off_w1"], meta["Rm"], meta["C"]

    B = obs.shape[0]
    assert obs.shape[1] == S and actions.shape[1] == A

    # Single host-side concat -> one K = S + A layer-0 MXU pass in the kernels.
    x = jnp.concatenate(
        [obs.astype(jnp.float32), actions.astype(jnp.float32)], axis=1)

    TB = max(128, min(_round_up(batch_tile, 128), _round_up(B, 128)))
    Bp = _round_up(B, TB)
    if Bp != B:
        x = jnp.pad(x, ((0, Bp - B), (0, 0)))
    NT = Bp // TB

    # ---- pass 1: BN statistics (sum, sum of squares of post-swish layer 0) -----
    stats = pl.pallas_call(
        functools.partial(_stats_kernel, Kin=Kin, H0p=H0p, TB=TB, B=B),
        out_shape=jax.ShapeDtypeStruct((2, H0p), jnp.float32),
        grid=(NT,),
        in_specs=[
            pl.BlockSpec((TB, Kin), lambda t: (t, 0)),
            pl.BlockSpec((Rm, C), lambda t: (0, 0)),      # params stay resident
            pl.BlockSpec((8, C), lambda t: (0, 0)),
        ],
        out_specs=pl.BlockSpec((2, H0p), lambda t: (0, 0)),
        compiler_params=pltpu.CompilerParams(dimension_semantics=("arbitrary",)),
    )(x, wmm, wvec)

    # Fold BN (batch mean, biased variance, gamma/beta) into scale/shift (tiny XLA).
    mean = stats[0] * (1.0 / B)
    var = jnp.maximum(stats[1] * (1.0 / B) - mean * mean, 0.0)
    inv_std = jax.lax.rsqrt(var + BN_EPS)
    gamma, beta = wvec[1, :H0p], wvec[2, :H0p]
    scale = gamma * inv_std
    shift = beta - mean * scale
    bnp = (jnp.zeros((8, C), jnp.float32)
           .at[0, :H0p].set(scale)
           .at[1, :H0p].set(shift))

    # ---- pass 2: forward per batch tile; tiles are independent -> "parallel" ---
    # (shards across v7x's two TensorCores; no-op on v5e/v6e single-TC chips).
    out_row = pl.pallas_call(
        functools.partial(_forward_kernel, Kin=Kin, H0p=H0p, H1p=H1p,
                          off_w1=off_w1),
        out_shape=jax.ShapeDtypeStruct((1, Bp), jnp.float32),
        grid=(NT,),
        in_specs=[
            pl.BlockSpec((TB, Kin), lambda t: (t, 0)),
            pl.BlockSpec((Rm, C), lambda t: (0, 0)),
            pl.BlockSpec((8, C), lambda t: (0, 0)),
            pl.BlockSpec((8, C), lambda t: (0, 0)),
        ],
        out_specs=pl.BlockSpec((1, TB), lambda t: (0, t)),
        compiler_params=pltpu.CompilerParams(dimension_semantics=("parallel",)),
    )(x, wmm, wvec, bnp)

    return out_row[0, :B].reshape(B, 1)


def pack_params(params, state_size, act_dim, H0, H1, *, weights_dtype=jnp.float32):
    """Pack parameters into two DMA-friendly slabs.

    wmm  (Rm, C) weights_dtype : matmul weights, hidden dims padded to x128 lanes,
                                 16-row section alignment (valid for f32 and bf16):
                                   rows [0      : Kin ]  W0  (S+A, H0)
                                   rows [off_w1 : +H0p]  W1  (H0,  H1)
    wvec (8, C)  f32           : rows 0 b0, 1 gamma, 2 beta, 3 b1, 4 wf, 5 [bf, 0..]
    """
    Kin = state_size + act_dim
    H0p, H1p = _round_up(H0, 128), _round_up(H1, 128)
    C = max(H0p, H1p)
    off_w1 = _round_up(Kin, 16)
    Rm = off_w1 + H0p

    wmm = jnp.zeros((Rm, C), jnp.float32)
    wmm = wmm.at[0:Kin, :H0].set(params["w0"])
    wmm = wmm.at[off_w1:off_w1 + H0, :H1].set(params["w1"])
    wmm = wmm.astype(weights_dtype)

    wvec = jnp.zeros((8, C), jnp.float32)
    wvec = wvec.at[0, :H0].set(params["b0"].reshape(H0))
    wvec = wvec.at[1, :H0].set(params["gamma"].reshape(H0))
    wvec = wvec.at[2, :H0].set(params["beta"].reshape(H0))
    wvec = wvec.at[3, :H1].set(params["b1"].reshape(H1))
    wvec = wvec.at[4, :H1].set(params["wf"].reshape(H1))
    wvec = wvec.at[5, 0].set(params["bf"].reshape(()))

    meta = dict(S=state_size, A=act_dim, H0=H0, H1=H1, H0p=H0p, H1p=H1p,
                Kin=Kin, off_w1=off_w1, Rm=Rm, C=C)
    return {"wmm": wmm, "wvec": wvec}, meta


# --------------------------------------------------------------------------- #
# Init / reference
# --------------------------------------------------------------------------- #
def init_params(key, in_dim, linear_dim):
    """Deterministic init mirroring the PyTorch module's reset_parameters.

    hidden_init uses lim = 1/sqrt(weight.size(0)) = 1/sqrt(out_features) as written
    in the reference; fc weight uses uniform(-3e-3, 3e-3).  BatchNorm1d: gamma=1,
    beta=0.  Weights are stored (in, out): x @ W + b.
    """
    dims = (in_dim,) + tuple(linear_dim)
    params = {}
    keys = jax.random.split(key, 2 * len(linear_dim) + 2)
    ki = 0
    for li, (din, dout) in enumerate(zip(dims[:-1], dims[1:])):
        lim = 1.0 / jnp.sqrt(jnp.float32(dout))          # per reference code
        params[f"w{li}"] = jax.random.uniform(
            keys[ki], (din, dout), jnp.float32, minval=-lim, maxval=lim)
        ki += 1
        blim = 1.0 / jnp.sqrt(jnp.float32(din))          # PyTorch default bias init
        params[f"b{li}"] = jax.random.uniform(
            keys[ki], (1, dout), jnp.float32, minval=-blim, maxval=blim)
        ki += 1
    params["wf"] = jax.random.uniform(
        keys[ki], (dims[-1], 1), jnp.float32, minval=-3e-3, maxval=3e-3)
    ki += 1
    blim = 1.0 / jnp.sqrt(jnp.float32(dims[-1]))
    params["bf"] = jax.random.uniform(
        keys[ki], (1, 1), jnp.float32, minval=-blim, maxval=blim)
    params["gamma"] = jnp.ones((1, dims[1]), jnp.float32)
    params["beta"] = jnp.zeros((1, dims[1]), jnp.float32)
    return params


def critic_ref(obs, actions, params):
    """Pure-JAX reference for correctness checking."""
    x = jnp.concatenate([obs, actions], axis=1).astype(jnp.float32)
    h = x @ params["w0"] + params["b0"]
    h = h * jax.nn.sigmoid(h)
    mean = jnp.mean(h, axis=0, keepdims=True)
    var = jnp.mean((h - mean) ** 2, axis=0, keepdims=True)
    h = (h - mean) * jax.lax.rsqrt(var + BN_EPS)
    h = h * params["gamma"] + params["beta"]
    h = h @ params["w1"] + params["b1"]
    h = h * jax.nn.sigmoid(h)
    return h @ params["wf"] + params["bf"]


# --------------------------------------------------------------------------- #
# Test
# --------------------------------------------------------------------------- #
if __name__ == "__main__":
    # Config consistent with the module: action_size=2, state_size=8, n_agent=2,
    # linear_dim=[32, 32], batch=8.
    action_size, state_size, n_agent = 2, 8, 2
    linear_dim = [32, 32]
    batch = 8
    act_dim = action_size * n_agent                      # 4
    in_dim = act_dim + state_size                        # 12

    key = jax.random.PRNGKey(0)
    k_params, k_obs, k_act = jax.random.split(key, 3)
    params = init_params(k_params, in_dim, linear_dim)

    obs = jax.random.normal(k_obs, (batch, state_size), jnp.float32)
    actions = jax.random.normal(k_act, (batch, act_dim), jnp.float32)

    ref = critic_ref(obs, actions, params)

    # f32 weights / f32 MXU operands: exact parity with the reference.
    packed32, meta32 = pack_params(params, state_size, act_dim,
                                   linear_dim[0], linear_dim[1],
                                   weights_dtype=jnp.float32)
    out32 = jax.block_until_ready(critic_forward(obs, actions, packed32, meta32))
    assert out32.shape == (batch, 1)
    assert jnp.allclose(out32, ref, atol=2e-5, rtol=1e-4), "f32 mismatch vs reference"

    # bf16-packed matmul weights (f32 accumulation, f32 VPU/EUP path): halves the
    # dominant weight DMA on v5e/v6e/v7x; looser tolerance (bf16 operand rounding).
    packed16, meta16 = pack_params(params, state_size, act_dim,
                                   linear_dim[0], linear_dim[1],
                                   weights_dtype=jnp.bfloat16)
    out16 = jax.block_until_ready(critic_forward(obs, actions, packed16, meta16))
    assert out16.shape == (batch, 1)
    assert bool(jnp.all(jnp.isfinite(out16)))
    assert float(jnp.max(jnp.abs(out16 - ref))) < 3e-2, "bf16 path drifted too far"

    print("KERNEL_OK")
</pallas_src>

<mosaic_0001>
module attributes {stable_mosaic.version = 11 : i64} {
  func.func @_stats_kernel(%arg0: i32, %arg1: memref<128x12xf32, #tpu.memory_space<vmem>>, %arg2: memref<144x128xf32, #tpu.memory_space<vmem>>, %arg3: memref<8x128xf32, #tpu.memory_space<vmem>>, %arg4: memref<2x128xf32, #tpu.memory_space<vmem>>) attributes {dimension_semantics = [#tpu.dimension_semantics<arbitrary>], iteration_bounds = array<i64: 1>, scalar_prefetch = 0 : i64, scratch_operands = 0 : i64, tpu.core_type = #tpu.core_type<tc>, window_params = [{transform_indices = @transform_0, window_bounds = array<i64: 128, 12>}, {pipeline_mode = #tpu.pipeline_mode<synchronous>, transform_indices = @transform_1, window_bounds = array<i64: 144, 128>}, {pipeline_mode = #tpu.pipeline_mode<synchronous>, transform_indices = @transform_2, window_bounds = array<i64: 8, 128>}, {pipeline_mode = #tpu.pipeline_mode<synchronous>, transform_indices = @transform_3, window_bounds = array<i64: 2, 128>}]} {
    %c0 = arith.constant 0 : index
    %c0_0 = arith.constant 0 : index
    %0 = vector.load %arg1[%c0, %c0_0] : memref<128x12xf32, #tpu.memory_space<vmem>>, vector<128x12xf32>
    %c0_1 = arith.constant 0 : index
    %c0_2 = arith.constant 0 : index
    %1 = vector.load %arg2[%c0_1, %c0_2] : memref<144x128xf32, #tpu.memory_space<vmem>>, vector<12x128xf32>
    %c0_3 = arith.constant 0 : index
    %c0_4 = arith.constant 0 : index
    %2 = vector.load %arg3[%c0_3, %c0_4] : memref<8x128xf32, #tpu.memory_space<vmem>>, vector<1x128xf32>
    %cst = arith.constant dense<0.000000e+00> : vector<128x128xf32>
    %3 = tpu.matmul %0, %1, %cst {dimension_numbers = #tpu.dot_dimension_numbers<[1], [0], [0], [1], [0, 0, 1, 1], [], []>} : vector<128x12xf32>, vector<12x128xf32>, vector<128x128xf32> -> vector<128x128xf32>
    %4 = vector.broadcast %2 : vector<1x128xf32> to vector<128x128xf32>
    %5 = arith.addf %3, %4 : vector<128x128xf32>
    %6 = arith.negf %5 : vector<128x128xf32>
    %7 = math.exp %6 : vector<128x128xf32>
    %cst_5 = arith.constant 1.000000e+00 : f32
    %8 = vector.broadcast %cst_5 : f32 to vector<128x128xf32>
    %9 = arith.addf %8, %7 : vector<128x128xf32>
    %10 = arith.divf %8, %9 : vector<128x128xf32>
    %11 = arith.mulf %5, %10 : vector<128x128xf32>
    %12 = tpu.iota {dimensions = array<i32: 1>} : vector<1x128xi32>
    %c128_i32 = arith.constant 128 : i32
    %13 = arith.muli %arg0, %c128_i32 : i32
    %14 = vector.broadcast %13 : i32 to vector<1x128xi32>
    %15 = arith.addi %12, %14 : vector<1x128xi32>
    %c8_i32 = arith.constant 8 : i32
    %16 = vector.broadcast %c8_i32 : i32 to vector<1x128xi32>
    %17 = arith.cmpi slt, %15, %16 : vector<1x128xi32>
    %18 = arith.extui %17 : vector<1x128xi1> to vector<1x128xi32>
    %19 = arith.sitofp %18 : vector<1x128xi32> to vector<1x128xf32>
    %cst_6 = arith.constant dense<0.000000e+00> : vector<1x128xf32>
    %20 = tpu.matmul %19, %11, %cst_6 {dimension_numbers = #tpu.dot_dimension_numbers<[1], [0], [0], [1], [0, 0, 1, 1], [], []>} : vector<1x128xf32>, vector<128x128xf32>, vector<1x128xf32> -> vector<1x128xf32>
    %21 = arith.mulf %11, %11 : vector<128x128xf32>
    %cst_7 = arith.constant dense<0.000000e+00> : vector<1x128xf32>
    %22 = tpu.matmul %19, %21, %cst_7 {dimension_numbers = #tpu.dot_dimension_numbers<[1], [0], [0], [1], [0, 0, 1, 1], [], []>} : vector<1x128xf32>, vector<128x128xf32>, vector<1x128xf32> -> vector<1x128xf32>
    %c0_i32 = arith.constant 0 : i32
    %23 = arith.cmpi eq, %arg0, %c0_i32 : i32
    %24 = arith.extui %23 : i1 to i32
    %c0_i32_8 = arith.constant 0 : i32
    %25 = arith.cmpi ne, %24, %c0_i32_8 : i32
    scf.if %25 {
      %cst_16 = arith.constant 0.000000e+00 : f32
      %32 = vector.broadcast %cst_16 : f32 to vector<2x128xf32>
      %c0_17 = arith.constant 0 : index
      %c0_18 = arith.constant 0 : index
      %33 = vector.load %arg4[%c0_17, %c0_18] : memref<2x128xf32, #tpu.memory_space<vmem>>, vector<2x128xf32>
      tpu.vector_store %arg4[%c0_17, %c0_18], %32 {strides = array<i32>} : memref<2x128xf32, #tpu.memory_space<vmem>>, vector<2x128xf32>,
    } else {
    }
    %c0_9 = arith.constant 0 : index
    %c0_10 = arith.constant 0 : index
    %26 = vector.load %arg4[%c0_9, %c0_10] : memref<2x128xf32, #tpu.memory_space<vmem>>, vector<1x128xf32>
    %27 = arith.addf %26, %20 : vector<1x128xf32>
    %c0_11 = arith.constant 0 : index
    %c0_12 = arith.constant 0 : index
    %28 = vector.load %arg4[%c0_11, %c0_12] : memref<2x128xf32, #tpu.memory_space<vmem>>, vector<1x128xf32>
    tpu.vector_store %arg4[%c0_11, %c0_12], %27 {strides = array<i32>} : memref<2x128xf32, #tpu.memory_space<vmem>>, vector<1x128xf32>,
    %c1 = arith.constant 1 : index
    %c0_13 = arith.constant 0 : index
    %29 = vector.load %arg4[%c1, %c0_13] : memref<2x128xf32, #tpu.memory_space<vmem>>, vector<1x128xf32>
    %30 = arith.addf %29, %22 : vector<1x128xf32>
    %c1_14 = arith.constant 1 : index
    %c0_15 = arith.constant 0 : index
    %31 = vector.load %arg4[%c1_14, %c0_15] : memref<2x128xf32, #tpu.memory_space<vmem>>, vector<1x128xf32>
    tpu.vector_store %arg4[%c1_14, %c0_15], %30 {strides = array<i32>} : memref<2x128xf32, #tpu.memory_space<vmem>>, vector<1x128xf32>,
    return
  }
  func.func @transform_0(%arg0: i32) -> (i32, i32) {
    %c0_i32 = arith.constant 0 : i32
    %c0_i32_0 = arith.constant 0 : i32
    return %arg0, %c0_i32 : i32, i32
  }
  func.func @transform_1(%arg0: i32) -> (i32, i32) {
    %c0_i32 = arith.constant 0 : i32
    %c0_i32_0 = arith.constant 0 : i32
    %c0_i32_1 = arith.constant 0 : i32
    return %c0_i32, %c0_i32_0 : i32, i32
  }
  func.func @transform_2(%arg0: i32) -> (i32, i32) {
    %c0_i32 = arith.constant 0 : i32
    %c0_i32_0 = arith.constant 0 : i32
    %c0_i32_1 = arith.constant 0 : i32
    return %c0_i32, %c0_i32_0 : i32, i32
  }
  func.func @transform_3(%arg0: i32) -> (i32, i32) {
    %c0_i32 = arith.constant 0 : i32
    %c0_i32_0 = arith.constant 0 : i32
    %c0_i32_1 = arith.constant 0 : i32
    return %c0_i32, %c0_i32_0 : i32, i32
  }
}

</mosaic_0001>

<bundles_post_ra>
// kernel: tpu_custom_call.1
= control target key start
LH: loop header
LB: loop body
LE: loop exit
PB: predicated region body
PF: predicated region fallthrough
CT: control target
= control target key end

     0   :  { %8 = vsyncpa [#allocation3], 0  ;;  %s1050_s0 = inlined_call_operand.vmem [shape: f32[128,12], index: 0, kind: input, shape index: {}]   ;;  %s1051_s1 = inlined_call_operand.vmem [shape: f32[144,128], index: 1, kind: input, shape index: {}]   ;;  %s1052_s2 = inlined_call_operand.hbm [shape: f32[8,128], index: 2, kind: input, shape index: {}]   ;;  %s1053_s3 = inlined_call_operand.hbm [shape: f32[2,128], index: 3, kind: output, shape index: {}]  }
   0x1   :  { %9 = vsyncpa [#allocation4], 0  ;;  %s850_s12 = smov [#allocation2]  }
   0x2   :  { %s20_s13 = sshll.u32 %s850_s12, 4  ;;  %s21_s13 = int_to_ptr.vmem [resolvable:$true] %s20_s13 }
   0x3   :  { %s814_s14 = scalar_lea.vmem %s21_s13, 128  ;;  %p819_p1 = scmp.lt.s32.totalorder %s21_s13, %s21_s13 }
   0x4   :  { %p815_p0 = scmp.ne.s32.totalorder %s21_s13, %s814_s14  ;;  %p820_p2 = scmp.lt.s32.totalorder %s814_s14, %s814_s14 }
   0x6   :  { %p821_p3 = por %p820_p2, %p819_p1 }
   0x8   :  { %p822_p4 = pnand %p821_p3, %p815_p0 }
   0xa   :  { %825 = shalt.err (!%p822_p4)
}
   0xb   :  { %23 = dma.hbm_to_vmem [thread:$0]  %s1052_s2, 128, %s21_s13, [#allocation3]  }
   0xc   :  { %846 = dma.done.wait [#allocation3], 128  }
   0xd   :  { %847 = vsyncadd [#allocation3], 4294967168  ;;  %vm99_vm0 = vcmask 1043456   ;;  %vm50_vm1 = vcmask 97280   ;;  %v44_v0 = vld [vmem:[%s1051_s1 + $0x8] sm:$0xf] }
   0xe   :  { %v43_v1 = vld [vmem:[%s1051_s1] sm:$0xff]  ;;  %639 = vmatprep.subr.msk.mxu0 %vm99_vm0, %v44_v0  ;;  %v28_v3 = vld [vmem:[%s1050_s0 + $0x8] sm:$0xff]  ;;  %v29_v4 = vld [vmem:[%s1050_s0 + $0x10] sm:$0xff]  ;;  %v851_v18 = vmov 0.0   ;;  %vm852_vm2 = vmmov 0  }
   0xf   :  { %v27_v2 = vld [vmem:[%s1050_s0] sm:$0xff]  ;;  %640 = vmatpush3.msk.msra.mxu0 %vm99_vm0, %v44_v0  ;;  %v30_v5 = vld [vmem:[%s1050_s0 + $0x18] sm:$0xff]  ;;  %v32_v7 = vld [vmem:[%s1050_s0 + $0x28] sm:$0xff]  ;;  %667 = vmatprep.subr.mxu1 %v851_v18  ;;  %528 = vst [vmem:[#allocation5] sm:$0x3] %v851_v18 }
  0x10   :  { %643 = vmatprep.mubr.msk.f32.mxu0 %vm50_vm1, %v27_v2  ;;  %641 = vmatprep.subr.mxu0 %v43_v1  ;;  %v31_v6 = vld [vmem:[%s1050_s0 + $0x20] sm:$0xff]  ;;  %v33_v8 = vld [vmem:[%s1050_s0 + $0x30] sm:$0xff]  ;;  %v34_v9 = vld [vmem:[%s1050_s0 + $0x38] sm:$0xff] }
  0x11   :  { %642 = vmatpush3.msra.mxu0 %v43_v1  ;;  %v35_v10 = vld [vmem:[%s1050_s0 + $0x40] sm:$0xff]  ;;  %v36_v11 = vld [vmem:[%s1050_s0 + $0x48] sm:$0xff]  ;;  %v37_v12 = vld [vmem:[%s1050_s0 + $0x50] sm:$0xff]  ;;  %699 = vmatprep.mubr.msk.f32.mxu1 %vm852_vm2, %v851_v18 }
  0x12   :  { %644 = vmatmul.mubr.msk.f32.vlgmr.msra.gmra.mxu0 %vm50_vm1, %v28_v3  ;;  %v38_v13 = vld [vmem:[%s1050_s0 + $0x58] sm:$0xff]  ;;  %v39_v14 = vld [vmem:[%s1050_s0 + $0x60] sm:$0xff]  ;;  %v40_v15 = vld [vmem:[%s1050_s0 + $0x68] sm:$0xff]  ;;  %702 = vmatprep.subr.mxu0 %v851_v18 }
  0x13   :  { %646 = vmatprep.mubr.msk.f32.mxu0 %vm50_vm1, %v29_v4  ;;  %v41_v16 = vld [vmem:[%s1050_s0 + $0x70] sm:$0xff]  ;;  %v42_v17 = vld [vmem:[%s1050_s0 + $0x78] sm:$0xff]  ;;  %v550_v31 = vld [vmem:[#allocation2] ss:$0 sm:$0xff]  ;;  %s854_s0 = smov [#allocation5]  }
  0x14   :  { %s541_s23 = sshll.u32 %s854_s0, 4  ;;  %s542_s23 = int_to_ptr.vmem [resolvable:$true] %s541_s23 }
  0x15   :  { %s826_s24 = scalar_lea.vmem %s542_s23, 32  ;;  %p831_p6 = scmp.lt.s32.totalorder %s542_s23, %s542_s23 }
  0x16   :  { %647 = vmatmul.mubr.msk.f32.gmra.mxu0 %vm50_vm1, %v30_v5  ;;  %p827_p5 = scmp.ne.s32.totalorder %s542_s23, %s826_s24  ;;  %p832_p7 = scmp.lt.s32.totalorder %s826_s24, %s826_s24 }
  0x17   :  { %649 = vmatprep.mubr.msk.f32.mxu0 %vm50_vm1, %v31_v6 }
  0x18   :  { %p833_p8 = por %p832_p7, %p831_p6 }
  0x1a   :  { %650 = vmatmul.mubr.msk.f32.gmra.mxu0 %vm50_vm1, %v32_v7  ;;  %p834_p9 = pnand %p833_p8, %p827_p5 }
  0x1b   :  { %652 = vmatprep.mubr.msk.f32.mxu0 %vm50_vm1, %v33_v8 }
  0x1e   :  { %653 = vmatmul.mubr.msk.f32.gmra.mxu0 %vm50_vm1, %v34_v9 }
  0x1f   :  { %655 = vmatprep.mubr.msk.f32.mxu0 %vm50_vm1, %v35_v10 }
  0x22   :  { %656 = vmatmul.mubr.msk.f32.gmra.mxu0 %vm50_vm1, %v36_v11 }
  0x23   :  { %658 = vmatprep.mubr.msk.f32.mxu0 %vm50_vm1, %v37_v12 }
  0x26   :  { %659 = vmatmul.mubr.msk.f32.gmra.mxu0 %vm50_vm1, %v38_v13 }
  0x27   :  { %661 = vmatprep.mubr.msk.f32.mxu0 %vm50_vm1, %v39_v14 }
  0x2a   :  { %662 = vmatmul.mubr.msk.f32.gmra.mxu0 %vm50_vm1, %v40_v15 }
  0x2b   :  { %664 = vmatprep.mubr.msk.f32.mxu0 %vm50_vm1, %v41_v16 }
  0x2e   :  { %665 = vmatmul.mubr.msk.f32.gmra.mxu0 %vm50_vm1, %v42_v17 }
  0x2f   :  { %734 = vmatprep.mubr.msk.f32.mxu0 %vm852_vm2, %v851_v18 }
  0xd2   :  { %v645_v19 = vpop.f32.mrf.mxu0 }
  0xd3   :  { %v995_v2 = vadd.f32 %v645_v19, %v550_v31 }
  0xd4   :  { %v169_v20 = vpop.f32.mrf.mxu0 }
  0xd5   :  { %v997_v6 = vadd.f32 %v550_v31, %v169_v20  ;;  %v569_v11 = vmul.f32 -1.442695, %v995_v2 }
  0xd6   :  { %v648_v21 = vpop.f32.mrf.mxu0 }
  0xd7   :  { %v981_v54 = vadd.f32 %v648_v21, %v550_v31  ;;  %v568_v15 = vmul.f32 -1.442695, %v997_v6 }
  0xd8   :  { %v179_v22 = vpop.f32.mrf.mxu0 }
  0xd9   :  { %v986_v57 = vadd.f32 %v550_v31, %v179_v22  ;;  %v571_v60 = vmul.f32 -1.442695, %v981_v54 }
  0xda   :  { %v651_v23 = vpop.f32.mrf.mxu0 }
  0xdb   :  { %v983_v55 = vadd.f32 %v651_v23, %v550_v31  ;;  %v570_v63 = vmul.f32 -1.442695, %v986_v57 }
  0xdc   :  { %v189_v24 = vpop.f32.mrf.mxu0 }
  0xdd   :  { %v988_v58 = vadd.f32 %v550_v31, %v189_v24  ;;  %v573_v61 = vmul.f32 -1.442695, %v983_v55 }
  0xde   :  { %v654_v25 = vpop.f32.mrf.mxu0 }
  0xdf   :  { %v975_v50 = vadd.f32 %v654_v25, %v550_v31  ;;  %v572_v0 = vmul.f32 -1.442695, %v988_v58 }
  0xe0   :  { %v199_v26 = vpop.f32.mrf.mxu0 }
  0xe1   :  { %v978_v52 = vadd.f32 %v550_v31, %v199_v26  ;;  %v575_v56 = vmul.f32 -1.442695, %v975_v50 }
  0xe2   :  { %v657_v27 = vpop.f32.mrf.mxu0 }
  0xe3   :  { %v966_v43 = vadd.f32 %v657_v27, %v550_v31  ;;  %v574_v59 = vmul.f32 -1.442695, %v978_v52 }
  0xe4   :  { %v209_v28 = vpop.f32.mrf.mxu0 }
  0xe5   :  { %v972_v48 = vadd.f32 %v550_v31, %v209_v28  ;;  %v577_v51 = vmul.f32 -1.442695, %v966_v43 }
  0xe6   :  { %v660_v29 = vpop.f32.mrf.mxu0 }
  0xe7   :  { %v953_v33 = vadd.f32 %v660_v29, %v550_v31  ;;  %v576_v53 = vmul.f32 -1.442695, %v972_v48 }
  0xe8   :  { %v219_v30 = vpop.f32.mrf.mxu0 }
  0xe9   :  { %v957_v36 = vadd.f32 %v550_v31, %v219_v30  ;;  %v579_v40 = vmul.f32 -1.442695, %v953_v33 }
  0xea   :  { %v663_v32 = vpop.f32.mrf.mxu0 }
  0xeb   :  { %v955_v34 = vadd.f32 %v663_v32, %v550_v31  ;;  %v578_v45 = vmul.f32 -1.442695, %v957_v36 }
  0xec   :  { %v229_v35 = vpop.f32.mrf.mxu0 }
  0xed   :  { %v581_v37 = vmul.f32 -1.442695, %v955_v34  ;;  %v960_v38 = vadd.f32 %v550_v31, %v229_v35 }
  0xee   :  { %v666_v39 = vpop.f32.mrf.mxu0 }
  0xef   :  { %v580_v41 = vmul.f32 -1.442695, %v960_v38  ;;  %v964_v42 = vadd.f32 %v666_v39, %v550_v31  ;;  %742 = vpow2.f32 %v581_v37 }
  0xf0   :  { %v239_v44 = vpop.f32.mrf.mxu0 }
  0xf1   :  { %v583_v46 = vmul.f32 -1.442695, %v964_v42  ;;  %v970_v47 = vadd.f32 %v550_v31, %v239_v44  ;;  %744 = vpow2.f32 %v580_v41 }
  0xf2   :  { %746 = vpow2.f32 %v579_v40 }
  0xf3   :  { %v582_v49 = vmul.f32 -1.442695, %v970_v47  ;;  %748 = vpow2.f32 %v583_v46 }
  0xf4   :  { %750 = vpow2.f32 %v578_v45 }
  0xf5   :  { %752 = vpow2.f32 %v582_v49 }
  0xf6   :  { %754 = vpow2.f32 %v577_v51 }
  0xf7   :  { %756 = vpow2.f32 %v576_v53 }
  0xf8   :  { %758 = vpow2.f32 %v575_v56 }
  0xf9   :  { %760 = vpow2.f32 %v574_v59 }
  0xfa   :  { %762 = vpow2.f32 %v571_v60 }
  0xfb   :  { %764 = vpow2.f32 %v573_v61 }
  0xfc   :  { %v743_v62 = vpop.eup %742  ;;  %766 = vpow2.f32 %v570_v63 }
  0xfd   :  { %v309_v3 = vadd.f32 1.0, %v743_v62  ;;  %768 = vpow2.f32 %v572_v0 }
  0xfe   :  { %v745_v1 = vpop.eup %744 }
  0xff   :  { %v747_v4 = vpop.eup %746  ;;  %v308_v7 = vadd.f32 1.0, %v745_v1  ;;  %770 = vrcp.f32 %v309_v3 }
 0x100   :  { %v749_v5 = vpop.eup %748  ;;  %v307_v12 = vadd.f32 1.0, %v747_v4 }
 0x101   :  { %v751_v8 = vpop.eup %750  ;;  %v311_v9 = vadd.f32 1.0, %v749_v5 }
 0x102   :  { %v753_v10 = vpop.eup %752  ;;  %v306_v16 = vadd.f32 1.0, %v751_v8 }
 0x103   :  { %772 = vrcp.f32 %v311_v9  ;;  %v310_v13 = vadd.f32 1.0, %v753_v10  ;;  %v755_v14 = vpop.eup %754 }
 0x104   :  { %774 = vrcp.f32 %v308_v7  ;;  %v757_v17 = vpop.eup %756  ;;  %v305_v19 = vadd.f32 1.0, %v755_v14 }
 0x105   :  { %776 = vrcp.f32 %v310_v13  ;;  %v759_v20 = vpop.eup %758  ;;  %v304_v21 = vadd.f32 1.0, %v757_v17 }
 0x106   :  { %778 = vpow2.f32 %v569_v11  ;;  %v761_v22 = vpop.eup %760  ;;  %v303_v24 = vadd.f32 1.0, %v759_v20 }
 0x107   :  { %780 = vrcp.f32 %v307_v12  ;;  %v763_v23 = vpop.eup %762  ;;  %v302_v27 = vadd.f32 1.0, %v761_v22 }
 0x108   :  { %782 = vpow2.f32 %v568_v15  ;;  %v765_v25 = vpop.eup %764  ;;  %v299_v40 = vadd.f32 1.0, %v763_v23 }
 0x109   :  { %784 = vrcp.f32 %v306_v16  ;;  %v767_v26 = vpop.eup %766  ;;  %v301_v30 = vadd.f32 1.0, %v765_v25  ;;  %v360_v16 = vlaneseq  ;;  %v529_v25 = vld [vmem:[#allocation5] sm:$0x1] }
 0x10a   :  { %786 = vrcp.f32 %v305_v19  ;;  %v769_v28 = vpop.eup %768  ;;  %v298_v53 = vadd.f32 1.0, %v767_v26 }
 0x10b   :  { %788 = vrcp.f32 %v304_v21  ;;  %v300_v35 = vadd.f32 1.0, %v769_v28  ;;  %v361_v22 = vand.u32 127, %v360_v16 }
 0x10c   :  { %v771_v29 = vpop.eup %770  ;;  %790 = vrcp.f32 %v303_v24 }
 0x10d   :  { %792 = vrcp.f32 %v302_v27  ;;  %v357_v44 = vmul.f32 %v771_v29, %v955_v34  ;;  %vm365_vm3 = vcmp.lt.s32.totalorder %v361_v22, 8  ;;  %v532_v27 = vld [vmem:[#allocation5 + $0x1] sm:$0x1] }
 0x10e   :  { %794 = vrcp.f32 %v301_v30 }
 0x10f   :  { %796 = vrcp.f32 %v300_v35  ;;  %v451_v60 = vmul.f32 %v357_v44, %v357_v44 }
 0x110   :  { %v773_v31 = vpop.eup %772  ;;  %798 = vrcp.f32 %v299_v40 }
 0x111   :  { %v775_v32 = vpop.eup %774  ;;  %v359_v37 = vmul.f32 %v773_v31, %v964_v42  ;;  %800 = vrcp.f32 %v298_v53 }
 0x112   :  { %v777_v39 = vpop.eup %776  ;;  %v356_v56 = vmul.f32 %v775_v32, %v960_v38 }
 0x113   :  { %v779_v41 = vpop.eup %778  ;;  %v358_v45 = vmul.f32 %v777_v39, %v970_v47  ;;  %668 = vmatpush3.msra.mxu1 %v359_v37  ;;  %v453_v46 = vmul.f32 %v359_v37, %v359_v37 }
 0x114   :  { %v781_v49 = vpop.eup %780  ;;  %669 = vmatprep.subr.mxu1 %v851_v18  ;;  %v297_v34 = vadd.f32 1.0, %v779_v41  ;;  %v450_v63 = vmul.f32 %v356_v56, %v356_v56 }
 0x115   :  { %v783_v51 = vpop.eup %782  ;;  %v452_v59 = vmul.f32 %v358_v45, %v358_v45  ;;  %670 = vmatpush3.msra.mxu1 %v358_v45  ;;  %703 = vmatpush3.msra.mxu0 %v453_v46  ;;  %v355_v47 = vmul.f32 %v781_v49, %v953_v33 }
 0x116   :  { %v785_v42 = vpop.eup %784  ;;  %671 = vmatprep.subr.mxu1 %v851_v18  ;;  %704 = vmatprep.subr.mxu0 %v851_v18  ;;  %v296_v38 = vadd.f32 1.0, %v783_v51  ;;  %802 = vrcp.f32 %v297_v34 }
 0x117   :  { %672 = vmatpush3.msra.mxu1 %v357_v44  ;;  %705 = vmatpush3.msra.mxu0 %v452_v59  ;;  %v787_v61 = vpop.eup %786  ;;  %v354_v62 = vmul.f32 %v785_v42, %v957_v36  ;;  %v449_v1 = vmul.f32 %v355_v47, %v355_v47 }
 0x118   :  { %673 = vmatprep.subr.mxu1 %v851_v18  ;;  %706 = vmatprep.subr.mxu0 %v851_v18  ;;  %v789_v0 = vpop.eup %788  ;;  %v353_v33 = vmul.f32 %v787_v61, %v966_v43  ;;  %804 = vrcp.f32 %v296_v38 }
 0x119   :  { %674 = vmatpush3.msra.mxu1 %v356_v56  ;;  %707 = vmatpush3.msra.mxu0 %v451_v60  ;;  %v791_v3 = vpop.eup %790  ;;  %v352_v36 = vmul.f32 %v789_v0, %v972_v48  ;;  %v448_v4 = vmul.f32 %v354_v62, %v354_v62 }
 0x11a   :  { %675 = vmatprep.subr.mxu1 %v851_v18  ;;  %708 = vmatprep.subr.mxu0 %v851_v18  ;;  %v793_v5 = vpop.eup %792  ;;  %v351_v43 = vmul.f32 %v791_v3, %v975_v50  ;;  %v447_v7 = vmul.f32 %v353_v33, %v353_v33 }
 0x11b   :  { %676 = vmatpush3.msra.mxu1 %v355_v47  ;;  %709 = vmatpush3.msra.mxu0 %v450_v63  ;;  %v795_v8 = vpop.eup %794  ;;  %v350_v48 = vmul.f32 %v793_v5, %v978_v52  ;;  %v446_v9 = vmul.f32 %v352_v36, %v352_v36 }
 0x11c   :  { %677 = vmatprep.subr.mxu1 %v851_v18  ;;  %710 = vmatprep.subr.mxu0 %v851_v18  ;;  %v797_v10 = vpop.eup %796  ;;  %v349_v50 = vmul.f32 %v795_v8, %v983_v55  ;;  %v445_v11 = vmul.f32 %v351_v43, %v351_v43 }
 0x11d   :  { %678 = vmatpush3.msra.mxu1 %v354_v62  ;;  %711 = vmatpush3.msra.mxu0 %v449_v1  ;;  %v799_v12 = vpop.eup %798  ;;  %v348_v52 = vmul.f32 %v797_v10, %v988_v58  ;;  %v444_v13 = vmul.f32 %v350_v48, %v350_v48 }
 0x11e   :  { %679 = vmatprep.subr.mxu1 %v851_v18  ;;  %712 = vmatprep.subr.mxu0 %v851_v18  ;;  %v801_v14 = vpop.eup %800  ;;  %v347_v55 = vmul.f32 %v799_v12, %v981_v54  ;;  %v443_v15 = vmul.f32 %v349_v50, %v349_v50 }
 0x11f   :  { %680 = vmatpush3.msra.mxu1 %v353_v33  ;;  %713 = vmatpush3.msra.mxu0 %v448_v4  ;;  %v346_v58 = vmul.f32 %v801_v14, %v986_v57  ;;  %v442_v19 = vmul.f32 %v348_v52, %v348_v52 }
 0x120   :  { %681 = vmatprep.subr.mxu1 %v851_v18  ;;  %714 = vmatprep.subr.mxu0 %v851_v18  ;;  %v441_v21 = vmul.f32 %v347_v55, %v347_v55 }
 0x121   :  { %682 = vmatpush3.msra.mxu1 %v352_v36  ;;  %715 = vmatpush3.msra.mxu0 %v447_v7  ;;  %v440_v23 = vmul.f32 %v346_v58, %v346_v58 }
 0x122   :  { %683 = vmatprep.subr.mxu1 %v851_v18  ;;  %716 = vmatprep.subr.mxu0 %v851_v18 }
 0x123   :  { %684 = vmatpush3.msra.mxu1 %v351_v43  ;;  %717 = vmatpush3.msra.mxu0 %v446_v9  ;;  %v803_v17 = vpop.eup %802 }
 0x124   :  { %685 = vmatprep.subr.mxu1 %v851_v18  ;;  %718 = vmatprep.subr.mxu0 %v851_v18  ;;  %v345_v54 = vmul.f32 %v803_v17, %v995_v2 }
 0x125   :  { %686 = vmatpush3.msra.mxu1 %v350_v48  ;;  %719 = vmatpush3.msra.mxu0 %v445_v11  ;;  %v805_v20 = vpop.eup %804 }
 0x126   :  { %687 = vmatprep.subr.mxu1 %v851_v18  ;;  %720 = vmatprep.subr.mxu0 %v851_v18  ;;  %v344_v57 = vmul.f32 %v805_v20, %v997_v6  ;;  %v439_v24 = vmul.f32 %v345_v54, %v345_v54  ;;  %v853_v6 = vmov 1.0  }
 0x127   :  { %688 = vmatpush3.msra.mxu1 %v349_v50  ;;  %721 = vmatpush3.msra.mxu0 %v444_v13 }
 0x128   :  { %689 = vmatprep.subr.mxu1 %v851_v18  ;;  %722 = vmatprep.subr.mxu0 %v851_v18  ;;  %v438_v2 = vmul.f32 %v344_v57, %v344_v57 }
 0x129   :  { %690 = vmatpush3.msra.mxu1 %v348_v52  ;;  %723 = vmatpush3.msra.mxu0 %v443_v15 }
 0x12a   :  { %691 = vmatprep.subr.mxu1 %v851_v18  ;;  %724 = vmatprep.subr.mxu0 %v851_v18 }
 0x12b   :  { %692 = vmatpush3.msra.mxu1 %v347_v55  ;;  %725 = vmatpush3.msra.mxu0 %v442_v19 }
 0x12c   :  { %693 = vmatprep.subr.mxu1 %v851_v18  ;;  %726 = vmatprep.subr.mxu0 %v851_v18 }
 0x12d   :  { %694 = vmatpush3.msra.mxu1 %v346_v58  ;;  %727 = vmatpush3.msra.mxu0 %v441_v21 }
 0x12e   :  { %695 = vmatprep.subr.mxu1 %v851_v18  ;;  %728 = vmatprep.subr.mxu0 %v851_v18 }
 0x12f   :  { %696 = vmatpush3.msra.mxu1 %v345_v54  ;;  %729 = vmatpush3.msra.mxu0 %v440_v23 }
 0x130   :  { %697 = vmatprep.subr.mxu1 %v851_v18  ;;  %730 = vmatprep.subr.mxu0 %v851_v18 }
 0x131   :  { %698 = vmatpush3.msra.mxu1 %v344_v57  ;;  %731 = vmatpush3.msra.mxu0 %v439_v24 }
 0x132   :  { %732 = vmatprep.subr.mxu0 %v851_v18  ;;  %700 = vmatmul.mubr.msk.f32.vlgmr.msra.gmra.mxu1 %vm365_vm3, %v853_v6 }
 0x133   :  { %733 = vmatpush3.msra.mxu0 %v438_v2 }
 0x134   :  { %735 = vmatmul.mubr.msk.f32.vlgmr.msra.gmra.mxu0 %vm365_vm3, %v853_v6 }
 0x1f2   :  { %v434_v26 = vpop.f32.mrf.mxu1 }
 0x1f3   :  { %v530_v28 = vadd.f32 %v529_v25, %v434_v26 }
 0x1f4   :  { %v520_v29 = vpop.f32.mrf.mxu0  ;;  %v701_v30 = vpop.f32.mrf.mxu1 }
 0x1f5   :  { %531 = vst [vmem:[#allocation5] sm:$0x1] %v530_v28  ;;  %v533_v31 = vadd.f32 %v532_v27, %v520_v29 }
 0x1f6   :  { %v736_v32 = vpop.f32.mrf.mxu0 }
 0x1f7   :  { %534 = vst [vmem:[#allocation5 + $0x1] sm:$0x1] %v533_v31 }
 0x1f8   :  { %837 = shalt.err (!%p834_p9)
}
 0x1f9   :  { %544 = dma.vmem_to_hbm [thread:$0]  %s542_s23, 32, %s1053_s3, [#allocation4]  }
 0x1fa   :  { %848 = dma.done.wait [#allocation4], 32  }
 0x1fb   :  { %849 = vsyncadd [#allocation4], 4294967264 }
 0x1fc   :  { %548 = vsyncpa [#allocation3], 1 }
 0x1fd   :  { %549 = vsyncpa [#allocation4], 1 }

</bundles_post_ra>
